<compile_context>
chip_gen: v5e
topology: v5e:2x2
jax: 0.10.0
libtpu: 0.0.40
codegen_flags: <defaults>
</compile_context>

<pallas_src>
import jax
import jax.numpy as jnp
from jax.experimental import pallas as pl
from jax.experimental.pallas import tpu as pltpu

HIDDEN = 256
SUBLANE = 8        # f32 sublane: batch tile must be a multiple of this
MAX_TILE_B = 1024  # sized so tiles + intermediates fit v5e's 16 MiB scoped VMEM


def _round_up(x, m):
    return (x + m - 1) // m * m


def _actor_kernel(x_ref, w1_ref, b1_ref, w2_ref, b2_ref, w3_ref, b3_ref, o_ref):
    """One (tile_b, ...) batch tile of the fused 3-layer MLP (all f32)."""
    x = x_ref[...]
    h1 = jnp.dot(x, w1_ref[...], preferred_element_type=jnp.float32) + b1_ref[...]
    h1 = jnp.maximum(h1, 0.0)
    h2 = jnp.dot(h1, w2_ref[...], preferred_element_type=jnp.float32) + b2_ref[...]
    h2 = jnp.maximum(h2, 0.0)
    h3 = jnp.dot(h2, w3_ref[...], preferred_element_type=jnp.float32) + b3_ref[...]
    o_ref[...] = jnp.tanh(h3).astype(o_ref.dtype)


@jax.jit
def actor_forward(state, params):
    """Fused 3-layer MLP forward.

    state:  (B, state_dim) f32
    params: dict with w1 (state_dim,256), b1 (1,256),
                      w2 (256,256),       b2 (1,256),
                      w3 (256,action_dim),b3 (1,action_dim)   -- all f32
    returns (B, action_dim) f32
    """
    w1, b1 = params["w1"], params["b1"]
    w2, b2 = params["w2"], params["b2"]
    w3, b3 = params["w3"], params["b3"]

    B, state_dim = state.shape
    hidden = w1.shape[1]
    action_dim = w3.shape[1]

    # --- Batch tiling ----------------------------------------------------
    # Multiple of the f32 sublane; aim for >= 2 grid steps (so v7x's two
    # TensorCores both get work) while capping the tile so VMEM stays small.
    b_pad8 = _round_up(B, SUBLANE)
    half = _round_up(-(-b_pad8 // 2), SUBLANE)          # ceil(b_pad8/2), sublane-aligned
    tile_b = max(SUBLANE, min(MAX_TILE_B, half))
    b_pad = _round_up(b_pad8, tile_b)

    # Padded batch rows compute garbage that is sliced off below; harmless.
    x_p = state if b_pad == B else jnp.pad(state, ((0, b_pad - B), (0, 0)))

    grid = (b_pad // tile_b,)

    # Weights/biases: constant index_map -> VMEM-resident; single buffer
    # (Buffered(1)) since there is nothing to pipeline for them.
    def _resident(shape):
        return pl.BlockSpec(shape, lambda i: (0, 0), pipeline_mode=pl.Buffered(1))

    out = pl.pallas_call(
        _actor_kernel,
        out_shape=jax.ShapeDtypeStruct((b_pad, action_dim), jnp.float32),
        grid=grid,
        in_specs=[
            pl.BlockSpec((tile_b, state_dim), lambda i: (i, 0)),  # x: tiled over batch
            _resident((state_dim, hidden)),                        # w1
            _resident((1, hidden)),                                # b1
            _resident((hidden, hidden)),                           # w2
            _resident((1, hidden)),                                # b2
            _resident((hidden, action_dim)),                       # w3 (unpadded)
            _resident((1, action_dim)),                            # b3 (unpadded)
        ],
        # Output block last dim == full array dim (action_dim): legal, no lane
        # padding, no dead writeback, no post-kernel column slice needed.
        out_specs=pl.BlockSpec((tile_b, action_dim), lambda i: (i, 0)),
        compiler_params=pltpu.CompilerParams(
            dimension_semantics=("parallel",)),  # batch axis shardable across TCs
    )(x_p, w1, b1, w2, b2, w3, b3)

    return out if b_pad == B else out[:B]


def init_actor_params(key, state_dim, action_dim, hidden=HIDDEN):
    """PyTorch-Linear-style init: U(-1/sqrt(fan_in), 1/sqrt(fan_in)), all f32."""
    ks = jax.random.split(key, 6)

    def lin(kw, kb, fan_in, fan_out):
        bound = 1.0 / jnp.sqrt(fan_in)
        w = jax.random.uniform(kw, (fan_in, fan_out), jnp.float32, -bound, bound)
        b = jax.random.uniform(kb, (1, fan_out), jnp.float32, -bound, bound)
        return w, b

    w1, b1 = lin(ks[0], ks[1], state_dim, hidden)
    w2, b2 = lin(ks[2], ks[3], hidden, hidden)
    w3, b3 = lin(ks[4], ks[5], hidden, action_dim)
    return {"w1": w1, "b1": b1, "w2": w2, "b2": b2, "w3": w3, "b3": b3}


def _reference_f32(state, p):
    """Pure-JAX f32 reference matching the PyTorch module."""
    h1 = jnp.maximum(state @ p["w1"] + p["b1"], 0.0)
    h2 = jnp.maximum(h1 @ p["w2"] + p["b2"], 0.0)
    return jnp.tanh(h2 @ p["w3"] + p["b3"])


if __name__ == "__main__":
    key = jax.random.PRNGKey(0)
    k_param, k_small, k_large = jax.random.split(key, 3)

    state_dim = 8
    action_dim = 4
    params = init_actor_params(k_param, state_dim, action_dim)

    # Small (inference-style) batch: single grid step.
    state_small = jax.random.normal(k_small, (2, state_dim), jnp.float32)
    out_small = jax.block_until_ready(actor_forward(state_small, params))
    assert out_small.shape == (2, action_dim)
    assert jnp.allclose(out_small, _reference_f32(state_small, params),
                        atol=2e-3, rtol=2e-3), "small-batch mismatch vs f32 reference"

    # Larger batch: exercises the multi-step batch-tiled grid.
    state_large = jax.random.normal(k_large, (512, state_dim), jnp.float32)
    out_large = jax.block_until_ready(actor_forward(state_large, params))
    assert out_large.shape == (512, action_dim)
    assert jnp.allclose(out_large, _reference_f32(state_large, params),
                        atol=2e-3, rtol=2e-3), "large-batch mismatch vs f32 reference"

    print("KERNEL_OK")
</pallas_src>

<mosaic_0001>
module attributes {stable_mosaic.version = 11 : i64} {
  func.func @_actor_kernel(%arg0: i32, %arg1: memref<8x8xf32, #tpu.memory_space<vmem>>, %arg2: memref<8x256xf32, #tpu.memory_space<vmem>>, %arg3: memref<1x256xf32, #tpu.memory_space<vmem>>, %arg4: memref<256x256xf32, #tpu.memory_space<vmem>>, %arg5: memref<1x256xf32, #tpu.memory_space<vmem>>, %arg6: memref<256x4xf32, #tpu.memory_space<vmem>>, %arg7: memref<1x4xf32, #tpu.memory_space<vmem>>, %arg8: memref<8x4xf32, #tpu.memory_space<vmem>>) attributes {dimension_semantics = [#tpu.dimension_semantics<parallel>], iteration_bounds = array<i64: 1>, scalar_prefetch = 0 : i64, scratch_operands = 0 : i64, tpu.core_type = #tpu.core_type<tc>, window_params = [{transform_indices = @transform_0, window_bounds = array<i64: 8, 8>}, {pipeline_mode = #tpu.pipeline_mode<synchronous>, transform_indices = @transform_1, window_bounds = array<i64: 8, 256>}, {pipeline_mode = #tpu.pipeline_mode<synchronous>, transform_indices = @transform_2, window_bounds = array<i64: 1, 256>}, {pipeline_mode = #tpu.pipeline_mode<synchronous>, transform_indices = @transform_3, window_bounds = array<i64: 256, 256>}, {pipeline_mode = #tpu.pipeline_mode<synchronous>, transform_indices = @transform_4, window_bounds = array<i64: 1, 256>}, {pipeline_mode = #tpu.pipeline_mode<synchronous>, transform_indices = @transform_5, window_bounds = array<i64: 256, 4>}, {pipeline_mode = #tpu.pipeline_mode<synchronous>, transform_indices = @transform_6, window_bounds = array<i64: 1, 4>}, {transform_indices = @transform_7, window_bounds = array<i64: 8, 4>}]} {
    %c0 = arith.constant 0 : index
    %c0_0 = arith.constant 0 : index
    %0 = vector.load %arg1[%c0, %c0_0] : memref<8x8xf32, #tpu.memory_space<vmem>>, vector<8x8xf32>
    %c0_1 = arith.constant 0 : index
    %c0_2 = arith.constant 0 : index
    %1 = vector.load %arg2[%c0_1, %c0_2] : memref<8x256xf32, #tpu.memory_space<vmem>>, vector<8x256xf32>
    %cst = arith.constant dense<0.000000e+00> : vector<8x256xf32>
    %2 = tpu.matmul %0, %1, %cst {dimension_numbers = #tpu.dot_dimension_numbers<[1], [0], [0], [1], [0, 0, 1, 1], [], []>} : vector<8x8xf32>, vector<8x256xf32>, vector<8x256xf32> -> vector<8x256xf32>
    %c0_3 = arith.constant 0 : index
    %c0_4 = arith.constant 0 : index
    %3 = vector.load %arg3[%c0_3, %c0_4] : memref<1x256xf32, #tpu.memory_space<vmem>>, vector<1x256xf32>
    %4 = vector.broadcast %3 : vector<1x256xf32> to vector<8x256xf32>
    %5 = arith.addf %2, %4 : vector<8x256xf32>
    %cst_5 = arith.constant 0.000000e+00 : f32
    %6 = vector.broadcast %cst_5 : f32 to vector<8x256xf32>
    %7 = arith.maximumf %5, %6 : vector<8x256xf32>
    %c0_6 = arith.constant 0 : index
    %c0_7 = arith.constant 0 : index
    %8 = vector.load %arg4[%c0_6, %c0_7] : memref<256x256xf32, #tpu.memory_space<vmem>>, vector<256x256xf32>
    %cst_8 = arith.constant dense<0.000000e+00> : vector<8x256xf32>
    %9 = tpu.matmul %7, %8, %cst_8 {dimension_numbers = #tpu.dot_dimension_numbers<[1], [0], [0], [1], [0, 0, 1, 1], [], []>} : vector<8x256xf32>, vector<256x256xf32>, vector<8x256xf32> -> vector<8x256xf32>
    %c0_9 = arith.constant 0 : index
    %c0_10 = arith.constant 0 : index
    %10 = vector.load %arg5[%c0_9, %c0_10] : memref<1x256xf32, #tpu.memory_space<vmem>>, vector<1x256xf32>
    %11 = vector.broadcast %10 : vector<1x256xf32> to vector<8x256xf32>
    %12 = arith.addf %9, %11 : vector<8x256xf32>
    %cst_11 = arith.constant 0.000000e+00 : f32
    %13 = vector.broadcast %cst_11 : f32 to vector<8x256xf32>
    %14 = arith.maximumf %12, %13 : vector<8x256xf32>
    %c0_12 = arith.constant 0 : index
    %c0_13 = arith.constant 0 : index
    %15 = vector.load %arg6[%c0_12, %c0_13] : memref<256x4xf32, #tpu.memory_space<vmem>>, vector<256x4xf32>
    %cst_14 = arith.constant dense<0.000000e+00> : vector<8x4xf32>
    %16 = tpu.matmul %14, %15, %cst_14 {dimension_numbers = #tpu.dot_dimension_numbers<[1], [0], [0], [1], [0, 0, 1, 1], [], []>} : vector<8x256xf32>, vector<256x4xf32>, vector<8x4xf32> -> vector<8x4xf32>
    %c0_15 = arith.constant 0 : index
    %c0_16 = arith.constant 0 : index
    %17 = vector.load %arg7[%c0_15, %c0_16] : memref<1x4xf32, #tpu.memory_space<vmem>>, vector<1x4xf32>
    %18 = vector.broadcast %17 : vector<1x4xf32> to vector<8x4xf32>
    %19 = arith.addf %16, %18 : vector<8x4xf32>
    %20 = math.tanh %19 : vector<8x4xf32>
    %c0_17 = arith.constant 0 : index
    %c0_18 = arith.constant 0 : index
    %21 = vector.load %arg8[%c0_17, %c0_18] : memref<8x4xf32, #tpu.memory_space<vmem>>, vector<8x4xf32>
    tpu.vector_store %arg8[%c0_17, %c0_18], %20 {strides = array<i32>} : memref<8x4xf32, #tpu.memory_space<vmem>>, vector<8x4xf32>,
    return
  }
  func.func @transform_0(%arg0: i32) -> (i32, i32) {
    %c0_i32 = arith.constant 0 : i32
    %c0_i32_0 = arith.constant 0 : i32
    return %arg0, %c0_i32 : i32, i32
  }
  func.func @transform_1(%arg0: i32) -> (i32, i32) {
    %c0_i32 = arith.constant 0 : i32
    %c0_i32_0 = arith.constant 0 : i32
    %c0_i32_1 = arith.constant 0 : i32
    return %c0_i32, %c0_i32_0 : i32, i32
  }
  func.func @transform_2(%arg0: i32) -> (i32, i32) {
    %c0_i32 = arith.constant 0 : i32
    %c0_i32_0 = arith.constant 0 : i32
    %c0_i32_1 = arith.constant 0 : i32
    return %c0_i32, %c0_i32_0 : i32, i32
  }
  func.func @transform_3(%arg0: i32) -> (i32, i32) {
    %c0_i32 = arith.constant 0 : i32
    %c0_i32_0 = arith.constant 0 : i32
    %c0_i32_1 = arith.constant 0 : i32
    return %c0_i32, %c0_i32_0 : i32, i32
  }
  func.func @transform_4(%arg0: i32) -> (i32, i32) {
    %c0_i32 = arith.constant 0 : i32
    %c0_i32_0 = arith.constant 0 : i32
    %c0_i32_1 = arith.constant 0 : i32
    return %c0_i32, %c0_i32_0 : i32, i32
  }
  func.func @transform_5(%arg0: i32) -> (i32, i32) {
    %c0_i32 = arith.constant 0 : i32
    %c0_i32_0 = arith.constant 0 : i32
    %c0_i32_1 = arith.constant 0 : i32
    return %c0_i32, %c0_i32_0 : i32, i32
  }
  func.func @transform_6(%arg0: i32) -> (i32, i32) {
    %c0_i32 = arith.constant 0 : i32
    %c0_i32_0 = arith.constant 0 : i32
    %c0_i32_1 = arith.constant 0 : i32
    return %c0_i32, %c0_i32_0 : i32, i32
  }
  func.func @transform_7(%arg0: i32) -> (i32, i32) {
    %c0_i32 = arith.constant 0 : i32
    %c0_i32_0 = arith.constant 0 : i32
    return %arg0, %c0_i32 : i32, i32
  }
}

</mosaic_0001>

<bundles_post_ra>
// kernel: actor_forward.1
= control target key start
LH: loop header
LB: loop body
LE: loop exit
PB: predicated region body
PF: predicated region fallthrough
CT: control target
= control target key end

     0   :  { %12 = vsyncpa [#allocation3], 0  ;;  %s367_s27 = smov [#allocation2]   ;;  %s368_s29 = smov 256   ;;  %s530_s0 = inlined_call_operand.vmem [shape: f32[8,8], index: 0, kind: input, shape index: {}]   ;;  %s531_s1 = inlined_call_operand.vmem [shape: f32[8,256], index: 1, kind: input, shape index: {}]   ;;  %s532_s2 = inlined_call_operand.vmem [shape: f32[1,256], index: 2, kind: input, shape index: {}]   ;;  %s533_s3 = inlined_call_operand.hbm [shape: f32[256,256], index: 3, kind: input, shape index: {}]   ;;  %s534_s4 = inlined_call_operand.vmem [shape: f32[1,256], index: 4, kind: input, shape index: {}]   ;;  %s535_s5 = inlined_call_operand.vmem [shape: f32[256,4], index: 5, kind: input, shape index: {}]   ;;  %s536_s6 = inlined_call_operand.vmem [shape: f32[1,4], index: 6, kind: input, shape index: {}]   ;;  %s537_s7 = inlined_call_operand.vmem [shape: f32[8,4], index: 7, kind: output, shape index: {}]  }
   0x1   :  { %s23_s26 = sshll.u32 %s533_s3, 4  ;;  %s25_s28 = sshll.u32 %s367_s27, 4  ;;  %s24_s26 = int_to_ptr.hbm [resolvable:$true] %s23_s26  ;;  %s26_s28 = int_to_ptr.vmem [resolvable:$true] %s25_s28 }
   0x2   :  { %s369_s30 = smov 16  }
   0x3   :  { %31 = dma.hbm_to_vmem [thread:$0]  %s24_s26, 8192, %s26_s28, [#allocation3], %s368_s29, %s368_s29, %s369_s30  }
   0x4   :  { %365 = dma.done.wait [#allocation3], 8192  }
   0x5   :  { %366 = vsyncadd [#allocation3], 4294959104  ;;  %vm51_vm0 = vcmask 64512   ;;  %v43_v0 = vld [vmem:[%s531_s1] sm:$0xff]  ;;  %v44_v2 = vld [vmem:[%s531_s1 + $0x8] sm:$0xff]  ;;  %vm326_vm1 = vcmask 31744  }
   0x6   :  { %v42_v1 = vld [vmem:[%s530_s0] sm:$0xff]  ;;  %70 = vmatpush.msra.mxu0 %v43_v0  ;;  %90 = vmatpush.msra.mxu1 %v44_v2  ;;  %v127_v3 = vld [vmem:[#allocation2 + $0xf0] sm:$0xff]  ;;  %v128_v4 = vld [vmem:[#allocation2 + $0xf8] sm:$0xff] }
   0x7   :  { %v125_v5 = vld [vmem:[#allocation2 + $0xe0] sm:$0xff]  ;;  %333 = vmatmul.msk.f32.vlgmr.msra.gmra.mxu0 %vm51_vm0, %v42_v1  ;;  %334 = vmatmul.msk.f32.vlgmr.msra.gmra.mxu1 %vm51_vm0, %v42_v1  ;;  %v159_v6 = vld [vmem:[#allocation2 + $0x1f0] sm:$0xff]  ;;  %v126_v7 = vld [vmem:[#allocation2 + $0xe8] sm:$0xff] }
   0x8   :  { %v160_v8 = vld [vmem:[#allocation2 + $0x1f8] sm:$0xff]  ;;  %167 = vmatpush.msra.mxu2 %v127_v3  ;;  %207 = vmatpush.msrb.mxu0 %v128_v4  ;;  %v157_v9 = vld [vmem:[#allocation2 + $0x1e0] sm:$0xff]  ;;  %v123_v10 = vld [vmem:[#allocation2 + $0xd0] sm:$0xff] }
   0x9   :  { %187 = vmatpush.msra.mxu3 %v159_v6  ;;  %227 = vmatpush.msrb.mxu1 %v160_v8  ;;  %v124_v11 = vld [vmem:[#allocation2 + $0xd8] sm:$0xff]  ;;  %v158_v12 = vld [vmem:[#allocation2 + $0x1e8] sm:$0xff]  ;;  %v155_v13 = vld [vmem:[#allocation2 + $0x1d0] sm:$0xff] }
   0xa   :  { %168 = vmatpush.msra.mxu2 %v125_v5  ;;  %208 = vmatpush.msrb.mxu0 %v126_v7  ;;  %v156_v14 = vld [vmem:[#allocation2 + $0x1d8] sm:$0xff]  ;;  %v121_v15 = vld [vmem:[#allocation2 + $0xc0] sm:$0xff]  ;;  %v122_v16 = vld [vmem:[#allocation2 + $0xc8] sm:$0xff] }
   0xb   :  { %188 = vmatpush.msra.mxu3 %v157_v9  ;;  %228 = vmatpush.msrb.mxu1 %v158_v12  ;;  %v153_v17 = vld [vmem:[#allocation2 + $0x1c0] sm:$0xff]  ;;  %v154_v18 = vld [vmem:[#allocation2 + $0x1c8] sm:$0xff]  ;;  %v119_v19 = vld [vmem:[#allocation2 + $0xb0] sm:$0xff] }
   0xc   :  { %169 = vmatpush.msra.mxu2 %v123_v10  ;;  %209 = vmatpush.msrb.mxu0 %v124_v11  ;;  %v120_v20 = vld [vmem:[#allocation2 + $0xb8] sm:$0xff]  ;;  %v151_v21 = vld [vmem:[#allocation2 + $0x1b0] sm:$0xff]  ;;  %v117_v23 = vld [vmem:[#allocation2 + $0xa0] sm:$0xff] }
   0xd   :  { %189 = vmatpush.msra.mxu3 %v155_v13  ;;  %229 = vmatpush.msrb.mxu1 %v156_v14  ;;  %v152_v22 = vld [vmem:[#allocation2 + $0x1b8] sm:$0xff]  ;;  %v118_v24 = vld [vmem:[#allocation2 + $0xa8] sm:$0xff]  ;;  %v149_v25 = vld [vmem:[#allocation2 + $0x1a0] sm:$0xff] }
   0xe   :  { %170 = vmatpush.msra.mxu2 %v121_v15  ;;  %210 = vmatpush.msrb.mxu0 %v122_v16  ;;  %v150_v26 = vld [vmem:[#allocation2 + $0x1a8] sm:$0xff]  ;;  %v115_v27 = vld [vmem:[#allocation2 + $0x90] sm:$0xff]  ;;  %v116_v28 = vld [vmem:[#allocation2 + $0x98] sm:$0xff] }
   0xf   :  { %190 = vmatpush.msra.mxu3 %v153_v17  ;;  %230 = vmatpush.msrb.mxu1 %v154_v18  ;;  %v147_v29 = vld [vmem:[#allocation2 + $0x190] sm:$0xff]  ;;  %v148_v30 = vld [vmem:[#allocation2 + $0x198] sm:$0xff]  ;;  %v113_v31 = vld [vmem:[#allocation2 + $0x80] sm:$0xff] }
  0x10   :  { %171 = vmatpush.msra.mxu2 %v119_v19  ;;  %211 = vmatpush.msrb.mxu0 %v120_v20  ;;  %v114_v32 = vld [vmem:[#allocation2 + $0x88] sm:$0xff]  ;;  %v145_v33 = vld [vmem:[#allocation2 + $0x180] sm:$0xff]  ;;  %v111_v35 = vld [vmem:[#allocation2 + $0x70] sm:$0xff] }
  0x11   :  { %191 = vmatpush.msra.mxu3 %v151_v21  ;;  %231 = vmatpush.msrb.mxu1 %v152_v22  ;;  %v146_v34 = vld [vmem:[#allocation2 + $0x188] sm:$0xff]  ;;  %v112_v36 = vld [vmem:[#allocation2 + $0x78] sm:$0xff]  ;;  %v143_v37 = vld [vmem:[#allocation2 + $0x170] sm:$0xff] }
  0x12   :  { %172 = vmatpush.msra.mxu2 %v117_v23  ;;  %212 = vmatpush.msrb.mxu0 %v118_v24  ;;  %v144_v38 = vld [vmem:[#allocation2 + $0x178] sm:$0xff]  ;;  %v109_v39 = vld [vmem:[#allocation2 + $0x60] sm:$0xff]  ;;  %v110_v40 = vld [vmem:[#allocation2 + $0x68] sm:$0xff] }
  0x13   :  { %192 = vmatpush.msra.mxu3 %v149_v25  ;;  %232 = vmatpush.msrb.mxu1 %v150_v26  ;;  %v141_v41 = vld [vmem:[#allocation2 + $0x160] sm:$0xff]  ;;  %v142_v42 = vld [vmem:[#allocation2 + $0x168] sm:$0xff]  ;;  %v107_v43 = vld [vmem:[#allocation2 + $0x50] sm:$0xff] }
  0x14   :  { %173 = vmatpush.msra.mxu2 %v115_v27  ;;  %213 = vmatpush.msrb.mxu0 %v116_v28  ;;  %v108_v44 = vld [vmem:[#allocation2 + $0x58] sm:$0xff]  ;;  %v139_v45 = vld [vmem:[#allocation2 + $0x150] sm:$0xff]  ;;  %v105_v47 = vld [vmem:[#allocation2 + $0x40] sm:$0xff] }
  0x15   :  { %193 = vmatpush.msra.mxu3 %v147_v29  ;;  %233 = vmatpush.msrb.mxu1 %v148_v30  ;;  %v140_v46 = vld [vmem:[#allocation2 + $0x158] sm:$0xff]  ;;  %v106_v48 = vld [vmem:[#allocation2 + $0x48] sm:$0xff]  ;;  %v137_v49 = vld [vmem:[#allocation2 + $0x140] sm:$0xff] }
  0x16   :  { %174 = vmatpush.msra.mxu2 %v113_v31  ;;  %214 = vmatpush.msrb.mxu0 %v114_v32  ;;  %v138_v50 = vld [vmem:[#allocation2 + $0x148] sm:$0xff]  ;;  %v103_v51 = vld [vmem:[#allocation2 + $0x30] sm:$0xff]  ;;  %v104_v52 = vld [vmem:[#allocation2 + $0x38] sm:$0xff] }
  0x17   :  { %194 = vmatpush.msra.mxu3 %v145_v33  ;;  %234 = vmatpush.msrb.mxu1 %v146_v34  ;;  %v101_v53 = vld [vmem:[#allocation2 + $0x20] sm:$0xff]  ;;  %v135_v54 = vld [vmem:[#allocation2 + $0x130] sm:$0xff]  ;;  %v102_v55 = vld [vmem:[#allocation2 + $0x28] sm:$0xff] }
  0x18   :  { %175 = vmatpush.msra.mxu2 %v111_v35  ;;  %215 = vmatpush.msrb.mxu0 %v112_v36  ;;  %v136_v56 = vld [vmem:[#allocation2 + $0x138] sm:$0xff]  ;;  %v99_v57 = vld [vmem:[#allocation2 + $0x10] sm:$0xff]  ;;  %v133_v58 = vld [vmem:[#allocation2 + $0x120] sm:$0xff] }
  0x19   :  { %195 = vmatpush.msra.mxu3 %v143_v37  ;;  %235 = vmatpush.msrb.mxu1 %v144_v38  ;;  %v100_v59 = vld [vmem:[#allocation2 + $0x18] sm:$0xff]  ;;  %v134_v60 = vld [vmem:[#allocation2 + $0x128] sm:$0xff]  ;;  %v97_v61 = vld [vmem:[#allocation2] sm:$0xff] }
  0x1a   :  { %176 = vmatpush.msra.mxu2 %v109_v39  ;;  %216 = vmatpush.msrb.mxu0 %v110_v40  ;;  %v131_v62 = vld [vmem:[#allocation2 + $0x110] sm:$0xff]  ;;  %v98_v63 = vld [vmem:[#allocation2 + $0x8] sm:$0xff]  ;;  %v132_v0 = vld [vmem:[#allocation2 + $0x118] sm:$0xff] }
  0x1b   :  { %196 = vmatpush.msra.mxu3 %v141_v41  ;;  %236 = vmatpush.msrb.mxu1 %v142_v42  ;;  %v129_v1 = vld [vmem:[#allocation2 + $0x100] sm:$0xff]  ;;  %v130_v2 = vld [vmem:[#allocation2 + $0x108] sm:$0xff]  ;;  %v280_v3 = vld [vmem:[%s535_s5 + $0xf8] sm:$0xff] }
  0x1c   :  { %177 = vmatpush.msra.mxu2 %v107_v43  ;;  %217 = vmatpush.msrb.mxu0 %v108_v44  ;;  %v279_v4 = vld [vmem:[%s535_s5 + $0xf0] sm:$0xff]  ;;  %v264_v5 = vld [vmem:[%s535_s5 + $0x78] sm:$0xff]  ;;  %v278_v7 = vld [vmem:[%s535_s5 + $0xe8] sm:$0xff] }
  0x1d   :  { %197 = vmatpush.msra.mxu3 %v139_v45  ;;  %237 = vmatpush.msrb.mxu1 %v140_v46  ;;  %v263_v6 = vld [vmem:[%s535_s5 + $0x70] sm:$0xff]  ;;  %v262_v8 = vld [vmem:[%s535_s5 + $0x68] sm:$0xff]  ;;  %v277_v9 = vld [vmem:[%s535_s5 + $0xe0] sm:$0xff] }
  0x1e   :  { %178 = vmatpush.msra.mxu2 %v105_v47  ;;  %218 = vmatpush.msrb.mxu0 %v106_v48  ;;  %v261_v10 = vld [vmem:[%s535_s5 + $0x60] sm:$0xff]  ;;  %v276_v11 = vld [vmem:[%s535_s5 + $0xd8] sm:$0xff]  ;;  %v275_v13 = vld [vmem:[%s535_s5 + $0xd0] sm:$0xff] }
  0x1f   :  { %198 = vmatpush.msra.mxu3 %v137_v49  ;;  %238 = vmatpush.msrb.mxu1 %v138_v50  ;;  %v260_v12 = vld [vmem:[%s535_s5 + $0x58] sm:$0xff]  ;;  %v259_v14 = vld [vmem:[%s535_s5 + $0x50] sm:$0xff]  ;;  %v274_v15 = vld [vmem:[%s535_s5 + $0xc8] sm:$0xff] }
  0x20   :  { %179 = vmatpush.msra.mxu2 %v103_v51  ;;  %219 = vmatpush.msrb.mxu0 %v104_v52  ;;  %v258_v16 = vld [vmem:[%s535_s5 + $0x48] sm:$0xff]  ;;  %v273_v17 = vld [vmem:[%s535_s5 + $0xc0] sm:$0xff]  ;;  %v272_v19 = vld [vmem:[%s535_s5 + $0xb8] sm:$0xff] }
  0x21   :  { %199 = vmatpush.msra.mxu3 %v135_v54  ;;  %239 = vmatpush.msrb.mxu1 %v136_v56  ;;  %v257_v18 = vld [vmem:[%s535_s5 + $0x40] sm:$0xff]  ;;  %v256_v20 = vld [vmem:[%s535_s5 + $0x38] sm:$0xff]  ;;  %v271_v21 = vld [vmem:[%s535_s5 + $0xb0] sm:$0xff] }
  0x22   :  { %180 = vmatpush.msra.mxu2 %v101_v53  ;;  %220 = vmatpush.msrb.mxu0 %v102_v55  ;;  %v270_v22 = vld [vmem:[%s535_s5 + $0xa8] sm:$0xff]  ;;  %v45_v23 = vld [vmem:[%s532_s2] sm:$0x3]  ;;  %v255_v33 = vld [vmem:[%s535_s5 + $0x30] sm:$0xff] }
  0x23   :  { %200 = vmatpush.msra.mxu3 %v133_v58  ;;  %240 = vmatpush.msrb.mxu1 %v134_v60  ;;  %v269_v24 = vld [vmem:[%s535_s5 + $0xa0] sm:$0xff]  ;;  %v47_v25 = vperm.slane %v45_v23, 0  ;;  %v48_v26 = vperm.slane %v45_v23, 1  ;;  %v268_v34 = vld [vmem:[%s535_s5 + $0x98] sm:$0xff]  ;;  %v254_v35 = vld [vmem:[%s535_s5 + $0x28] sm:$0xff] }
  0x24   :  { %181 = vmatpush.msra.mxu2 %v99_v57  ;;  %221 = vmatpush.msrb.mxu0 %v100_v59  ;;  %v267_v36 = vld [vmem:[%s535_s5 + $0x90] sm:$0xff]  ;;  %v253_v37 = vld [vmem:[%s535_s5 + $0x20] sm:$0xff]  ;;  %v266_v38 = vld [vmem:[%s535_s5 + $0x88] sm:$0xff] }
  0x25   :  { %201 = vmatpush.msra.mxu3 %v131_v62  ;;  %241 = vmatpush.msrb.mxu1 %v132_v0  ;;  %v252_v39 = vld [vmem:[%s535_s5 + $0x18] sm:$0xff]  ;;  %v265_v40 = vld [vmem:[%s535_s5 + $0x80] sm:$0xff]  ;;  %v251_v41 = vld [vmem:[%s535_s5 + $0x10] sm:$0xff] }
  0x26   :  { %182 = vmatpush.msra.mxu2 %v97_v61  ;;  %222 = vmatpush.msrb.mxu0 %v98_v63  ;;  %v250_v42 = vld [vmem:[%s535_s5 + $0x8] sm:$0xff]  ;;  %v249_v43 = vld [vmem:[%s535_s5] sm:$0xff] }
  0x27   :  { %202 = vmatpush.msra.mxu3 %v129_v1  ;;  %242 = vmatpush.msrb.mxu1 %v130_v2  ;;  %v161_v44 = vld [vmem:[%s534_s4] sm:$0x3] }
  0x28   :  { %285 = vmatpush.msrb.mxu2 %v264_v5  ;;  %v164_v45 = vperm.slane %v161_v44, 1  ;;  %v163_v50 = vperm.slane %v161_v44, 0  ;;  %v338_v57 = vld [vmem:[%s536_s6] ss:$0 sm:$0xff] }
  0x29   :  { %305 = vmatpush.msrb.mxu3 %v280_v3 }
  0x2a   :  { %286 = vmatpush.msrb.mxu2 %v263_v6 }
  0x2b   :  { %306 = vmatpush.msrb.mxu3 %v279_v4 }
  0x2c   :  { %287 = vmatpush.msrb.mxu2 %v262_v8 }
  0x2d   :  { %307 = vmatpush.msrb.mxu3 %v278_v7 }
  0x2e   :  { %288 = vmatpush.msrb.mxu2 %v261_v10 }
  0x2f   :  { %308 = vmatpush.msrb.mxu3 %v277_v9 }
  0x30   :  { %289 = vmatpush.msrb.mxu2 %v260_v12 }
  0x31   :  { %309 = vmatpush.msrb.mxu3 %v276_v11 }
  0x32   :  { %290 = vmatpush.msrb.mxu2 %v259_v14 }
  0x33   :  { %310 = vmatpush.msrb.mxu3 %v275_v13 }
  0x34   :  { %291 = vmatpush.msrb.mxu2 %v258_v16 }
  0x35   :  { %311 = vmatpush.msrb.mxu3 %v274_v15 }
  0x36   :  { %292 = vmatpush.msrb.mxu2 %v257_v18 }
  0x37   :  { %312 = vmatpush.msrb.mxu3 %v273_v17 }
  0x38   :  { %293 = vmatpush.msrb.mxu2 %v256_v20 }
  0x39   :  { %313 = vmatpush.msrb.mxu3 %v272_v19 }
  0x3a   :  { %294 = vmatpush.msrb.mxu2 %v255_v33 }
  0x3b   :  { %314 = vmatpush.msrb.mxu3 %v271_v21 }
  0x3c   :  { %295 = vmatpush.msrb.mxu2 %v254_v35 }
  0x3d   :  { %315 = vmatpush.msrb.mxu3 %v270_v22 }
  0x3e   :  { %296 = vmatpush.msrb.mxu2 %v253_v37 }
  0x3f   :  { %316 = vmatpush.msrb.mxu3 %v269_v24 }
  0x40   :  { %297 = vmatpush.msrb.mxu2 %v252_v39 }
  0x41   :  { %317 = vmatpush.msrb.mxu3 %v268_v34 }
  0x42   :  { %298 = vmatpush.msrb.mxu2 %v251_v41 }
  0x43   :  { %318 = vmatpush.msrb.mxu3 %v267_v36 }
  0x44   :  { %299 = vmatpush.msrb.mxu2 %v250_v42 }
  0x45   :  { %319 = vmatpush.msrb.mxu3 %v266_v38 }
  0x46   :  { %300 = vmatpush.msrb.mxu2 %v249_v43 }
  0x47   :  { %320 = vmatpush.msrb.mxu3 %v265_v40 }
  0x84   :  { %v72_v27 = vpop.f32.mrf.mxu0  ;;  %v92_v28 = vpop.f32.mrf.mxu1 }
  0x85   :  { %v73_v29 = vadd.f32 %v72_v27, %v47_v25  ;;  %v93_v30 = vadd.f32 %v92_v28, %v48_v26 }
  0x87   :  { %v95_v31 = vmax.f32 %v73_v29, 0.0  ;;  %v96_v32 = vmax.f32 %v93_v30, 0.0 }
  0x89   :  { %183 = vmatmul.f32.vlgmr.msra.gmra.mxu2 %v95_v31  ;;  %223 = vmatmul.f32.vlgmr.msrb.gmra.mxu0 %v95_v31 }
  0x8a   :  { %203 = vmatmul.f32.vlgmr.msra.gmra.mxu3 %v96_v32  ;;  %243 = vmatmul.f32.vlgmr.msrb.gmra.mxu1 %v96_v32 }
 0x106   :  { %v224_v46 = vpop.f32.mrf.mxu0 }
 0x107   :  { %v225_v47 = vadd.f32 %v224_v46, %v164_v45  ;;  %v244_v48 = vpop.f32.mrf.mxu1 }
 0x109   :  { %v245_v49 = vadd.f32 %v244_v48, %v225_v47 }
 0x10b   :  { %v248_v51 = vmax.f32 %v245_v49, 0.0 }
 0x10c   :  { %v184_v52 = vpop.f32.mrf.mxu2 }
 0x10d   :  { %v185_v53 = vadd.f32 %v184_v52, %v163_v50  ;;  %321 = vmatmul.f32.vlgmr.msrb.gmra.mxu3 %v248_v51  ;;  %v204_v54 = vpop.f32.mrf.mxu3 }
 0x10f   :  { %v205_v55 = vadd.f32 %v204_v54, %v185_v53 }
 0x111   :  { %v247_v56 = vmax.f32 %v205_v55, 0.0 }
 0x113   :  { %301 = vmatmul.f32.vlgmr.msrb.gmra.mxu2 %v247_v56 }
 0x190   :  { %v322_v60 = vpop.f32.mrf.mxu3 }
 0x196   :  { %v302_v58 = vpop.f32.mrf.mxu2 }
 0x197   :  { %v303_v59 = vadd.f32 %v338_v57, %v302_v58 }
 0x199   :  { %v323_v61 = vadd.f32 %v322_v60, %v303_v59 }
 0x19b   :  { %339 = vtanh.f32 %v323_v61 }
 0x1a1   :  { %v340_v62 = vpop.eup %339 }
 0x1a2   :  { %327 = vst.msk [vmem:[%s537_s7] sm:$0xff] %vm326_vm1, %v340_v62 }
 0x1a3   :  { %332 = vsyncpa [#allocation3], 1 }

</bundles_post_ra>
